<compile_context>
chip_gen: v7x
topology: tpu7x:2x2x1
jax: 0.10.0
libtpu: 0.0.40
codegen_flags: <defaults>
</compile_context>

<pallas_src>
import functools
import math

import jax
import jax.numpy as jnp
from jax.experimental import pallas as pl
from jax.experimental.pallas import tpu as pltpu


# ----------------------------------------------------------------------------
# Helpers
# ----------------------------------------------------------------------------
_TRANS_B = (((1,), (1,)), ((), ()))   # dot_general: contract last dims (q @ k^T)


def _row_tile(n, cap=512):
    """Row-tile size: whole array if small, otherwise a multiple-of-8 cap."""
    return n if n <= cap else cap


def _vmem_limit_bytes(block_bytes):
    """Double-buffered block footprint + slack, clamped to a safe scoped-VMEM range."""
    need = 2 * block_bytes + (2 << 20)
    return int(min(max(need, 32 << 20), 64 << 20))


# ----------------------------------------------------------------------------
# Kernel 1: fused (src + pos) + packed Q|K projection + V projection + attention
# ----------------------------------------------------------------------------
def _attn_kernel(src_ref, pos_ref, wqk_ref, bqk_ref, wv_ref, bv_ref, o_ref, *, nhead):
    src = src_ref[...]                                        # bf16 [S, D]
    qk_in = src + pos_ref[...]                                # with_pos_embed (bf16)
    S, D = src.shape
    dh = D // nhead

    # Single MXU pass for Q|K (scale already folded into the Q half of wqk/bqk).
    qk = jnp.dot(qk_in, wqk_ref[...], preferred_element_type=jnp.float32) + bqk_ref[...]
    v = jnp.dot(src, wv_ref[...], preferred_element_type=jnp.float32) + bv_ref[...]
    q = qk[:, :D].astype(jnp.bfloat16)
    k = qk[:, D:].astype(jnp.bfloat16)
    vb = v.astype(jnp.bfloat16)

    for h in range(nhead):                                    # static unroll
        sl = slice(h * dh, (h + 1) * dh)
        s = jax.lax.dot_general(q[:, sl], k[:, sl], _TRANS_B,
                                preferred_element_type=jnp.float32)
        s = s - jnp.max(s, axis=-1, keepdims=True)
        p = jnp.exp(s)
        inv = pl.reciprocal(jnp.sum(p, axis=-1, keepdims=True), approx=True)
        p = (p * inv).astype(jnp.bfloat16)
        # Direct per-head store: only one head's output live, no concatenate.
        o_ref[:, sl] = jnp.dot(p, vb[:, sl],
                               preferred_element_type=jnp.float32).astype(o_ref.dtype)


def attention_block(src_b, pos_b, wqk, bqk, wv, bv, nhead):
    """src_b, pos_b: [B, S, D] bf16. Returns per-head attention output [B, S, D] bf16."""
    B, S, D = src_b.shape
    seq = pl.BlockSpec((pl.Squeezed(), S, D), lambda b: (b, 0, 0))
    wqk_s = pl.BlockSpec((D, 2 * D), lambda b: (0, 0))     # constant block -> resident
    bqk_s = pl.BlockSpec((1, 2 * D), lambda b: (0, 0))
    wv_s = pl.BlockSpec((D, D), lambda b: (0, 0))
    bv_s = pl.BlockSpec((1, D), lambda b: (0, 0))

    blk = (3 * S * D * 2                                   # src, pos, out (bf16)
           + (D * 2 * D + D * D) * 2                       # wqk, wv (bf16)
           + (2 * D + D) * 4)                              # bqk, bv (f32)
    return pl.pallas_call(
        functools.partial(_attn_kernel, nhead=nhead),
        out_shape=jax.ShapeDtypeStruct((B, S, D), jnp.bfloat16),
        grid_spec=pl.GridSpec(
            grid=(B,),
            in_specs=[seq, seq, wqk_s, bqk_s, wv_s, bv_s],
            out_specs=seq,
        ),
        compiler_params=pltpu.CompilerParams(
            dimension_semantics=("parallel",),
            vmem_limit_bytes=_vmem_limit_bytes(blk)),
    )(src_b, pos_b, wqk, bqk.reshape(1, 2 * D), wv, bv.reshape(1, D))


# ----------------------------------------------------------------------------
# Kernel 2: output projection + residual + LN1 + FFN + residual + LN2
# ----------------------------------------------------------------------------
def _epilogue_kernel(a_ref, res_ref, wo_ref, bo_ref, g1_ref, be1_ref,
                     w1_ref, b1_ref, w2_ref, b2_ref, g2_ref, be2_ref,
                     o_ref, *, eps):
    # Output projection + residual + LayerNorm1 (stats in f32).
    y = jnp.dot(a_ref[...], wo_ref[...], preferred_element_type=jnp.float32) + bo_ref[...]
    z = res_ref[...].astype(jnp.float32) + y
    mu = jnp.mean(z, axis=-1, keepdims=True)
    var = jnp.mean(jnp.square(z - mu), axis=-1, keepdims=True)
    h = (z - mu) * jax.lax.rsqrt(var + eps) * g1_ref[...] + be1_ref[...]

    # FFN (dim_ff intermediate stays in VMEM) + residual + LayerNorm2.
    hb = h.astype(jnp.bfloat16)
    f = jnp.dot(hb, w1_ref[...], preferred_element_type=jnp.float32) + b1_ref[...]
    f = jnp.maximum(f, 0.0).astype(jnp.bfloat16)
    y2 = jnp.dot(f, w2_ref[...], preferred_element_type=jnp.float32) + b2_ref[...]
    z2 = h + y2
    mu2 = jnp.mean(z2, axis=-1, keepdims=True)
    var2 = jnp.mean(jnp.square(z2 - mu2), axis=-1, keepdims=True)
    out = (z2 - mu2) * jax.lax.rsqrt(var2 + eps) * g2_ref[...] + be2_ref[...]
    o_ref[...] = out.astype(o_ref.dtype)


def proj_ln_ffn_ln(a, res, p, tm, eps=1e-5):
    """LN2(h + FFN(h)) with h = LN1(res + a @ Wo + bo). a, res: [N, D] bf16 -> [N, D] bf16."""
    N, D = a.shape
    Fdim = p["w1"].shape[1]
    row = pl.BlockSpec((tm, D), lambda i: (i, 0))
    wo_s = pl.BlockSpec((D, D), lambda i: (0, 0))
    w1_s = pl.BlockSpec((D, Fdim), lambda i: (0, 0))
    w2_s = pl.BlockSpec((Fdim, D), lambda i: (0, 0))
    vd = pl.BlockSpec((1, D), lambda i: (0, 0))
    vf = pl.BlockSpec((1, Fdim), lambda i: (0, 0))

    blk = (3 * tm * D * 2                                  # a, res, out (bf16)
           + (D * D + 2 * D * Fdim) * 2                    # wo, w1, w2 (bf16)
           + 6 * D * 4 + Fdim * 4)                         # biases + LN params (f32)
    return pl.pallas_call(
        functools.partial(_epilogue_kernel, eps=eps),
        out_shape=jax.ShapeDtypeStruct((N, D), jnp.bfloat16),
        grid_spec=pl.GridSpec(
            grid=(pl.cdiv(N, tm),),
            in_specs=[row, row, wo_s, vd, vd, vd, w1_s, vf, w2_s, vd, vd, vd],
            out_specs=row,
        ),
        compiler_params=pltpu.CompilerParams(
            dimension_semantics=("parallel",),
            vmem_limit_bytes=_vmem_limit_bytes(blk)),
    )(a, res, p["wo"], p["bo"].reshape(1, D),
      p["ln1_g"].reshape(1, D), p["ln1_b"].reshape(1, D),
      p["w1"], p["b1"].reshape(1, Fdim), p["w2"], p["b2"].reshape(1, D),
      p["ln2_g"].reshape(1, D), p["ln2_b"].reshape(1, D))


# ----------------------------------------------------------------------------
# Encoder layer / encoder (plain-JAX glue: only free reshapes, no per-layer transposes)
# ----------------------------------------------------------------------------
def encoder_layer_forward(src_b, pos_b, p, nhead, row_cap=512):
    """src_b, pos_b: [B, S, D] bf16 -> [B, S, D] bf16."""
    B, S, D = src_b.shape
    N = B * S
    tm = _row_tile(N, row_cap)
    a = attention_block(src_b, pos_b, p["wqk"], p["bqk"], p["wv"], p["bv"], nhead)
    out = proj_ln_ffn_ln(a.reshape(N, D), src_b.reshape(N, D), p, tm)
    return out.reshape(B, S, D)


def transformer_encoder_forward(src_sbd, pos_sbd, layer_params, nhead):
    """src_sbd, pos_sbd: [S, B, D] f32 (seq-first, torch MHA layout) -> [S, B, D] f32."""
    # TODO(synk): src_mask / src_key_padding_mask not supported (None path only).
    src = jnp.transpose(src_sbd, (1, 0, 2)).astype(jnp.bfloat16)   # residual stream in bf16
    pos = jnp.transpose(pos_sbd, (1, 0, 2)).astype(jnp.bfloat16)
    out = src
    for p in layer_params:
        out = encoder_layer_forward(out, pos, p, nhead)
    # self.norm is None for the post-norm encoder configuration.
    return jnp.transpose(out, (1, 0, 2)).astype(jnp.float32)


# ----------------------------------------------------------------------------
# Parameters: raw f32 (torch-like), then host-side packing done once
# ----------------------------------------------------------------------------
def init_layer_params(key, d_model, dim_ff):
    ks = jax.random.split(key, 6)
    s = 0.1

    def w(k, shape):
        return s * jax.random.normal(k, shape, jnp.float32)

    return {
        "wq": w(ks[0], (d_model, d_model)), "bq": jnp.zeros((d_model,), jnp.float32),
        "wk": w(ks[1], (d_model, d_model)), "bk": jnp.zeros((d_model,), jnp.float32),
        "wv": w(ks[2], (d_model, d_model)), "bv": jnp.zeros((d_model,), jnp.float32),
        "wo": w(ks[3], (d_model, d_model)), "bo": jnp.zeros((d_model,), jnp.float32),
        "ln1_g": jnp.ones((d_model,), jnp.float32),
        "ln1_b": jnp.zeros((d_model,), jnp.float32),
        "w1": w(ks[4], (d_model, dim_ff)), "b1": jnp.zeros((dim_ff,), jnp.float32),
        "w2": w(ks[5], (dim_ff, d_model)), "b2": jnp.zeros((d_model,), jnp.float32),
        "ln2_g": jnp.ones((d_model,), jnp.float32),
        "ln2_b": jnp.zeros((d_model,), jnp.float32),
    }


def pack_layer_params(p, nhead):
    """Host-side, once: fold 1/sqrt(dh) into Wq/bq, pack Wq|Wk, cast matmul weights to bf16."""
    d_model = p["wq"].shape[0]
    scale = 1.0 / math.sqrt(d_model // nhead)
    wqk = jnp.concatenate([p["wq"] * scale, p["wk"]], axis=1).astype(jnp.bfloat16)
    bqk = jnp.concatenate([p["bq"] * scale, p["bk"]], axis=0).astype(jnp.float32)
    return {
        "wqk": wqk, "bqk": bqk,
        "wv": p["wv"].astype(jnp.bfloat16), "bv": p["bv"],
        "wo": p["wo"].astype(jnp.bfloat16), "bo": p["bo"],
        "ln1_g": p["ln1_g"], "ln1_b": p["ln1_b"],
        "w1": p["w1"].astype(jnp.bfloat16), "b1": p["b1"],
        "w2": p["w2"].astype(jnp.bfloat16), "b2": p["b2"],
        "ln2_g": p["ln2_g"], "ln2_b": p["ln2_b"],
    }


if __name__ == "__main__":
    # Small shapes consistent with the module: S tokens, batch B, hidden D,
    # nhead heads, FFN width FF, NUM_LAYERS encoder layers.
    S, B, D = 8, 2, 32
    NHEAD, FF, NUM_LAYERS = 4, 64, 2

    key = jax.random.PRNGKey(0)
    k_src, k_pos, k_par = jax.random.split(key, 3)
    src = jax.random.normal(k_src, (S, B, D), jnp.float32)   # [S, B, D]
    pos = jax.random.normal(k_pos, (S, B, D), jnp.float32)   # [S, B, D]

    layer_keys = jax.random.split(k_par, NUM_LAYERS)
    layer_params = [pack_layer_params(init_layer_params(k, D, FF), NHEAD)
                    for k in layer_keys]

    fwd = jax.jit(functools.partial(transformer_encoder_forward, nhead=NHEAD))
    out = jax.block_until_ready(fwd(src, pos, layer_params))
    assert out.shape == (S, B, D)
    assert jnp.all(jnp.isfinite(out))
    print("KERNEL_OK")
</pallas_src>

<mosaic_0001>
module attributes {stable_mosaic.version = 11 : i64} {
  func.func @_attn_kernel(%arg0: i32, %arg1: memref<1x8x32xbf16, #tpu.memory_space<vmem>>, %arg2: memref<1x8x32xbf16, #tpu.memory_space<vmem>>, %arg3: memref<32x64xbf16, #tpu.memory_space<vmem>>, %arg4: memref<1x64xf32, #tpu.memory_space<vmem>>, %arg5: memref<32x32xbf16, #tpu.memory_space<vmem>>, %arg6: memref<1x32xf32, #tpu.memory_space<vmem>>, %arg7: memref<1x8x32xbf16, #tpu.memory_space<vmem>>) attributes {dimension_semantics = [#tpu.dimension_semantics<parallel>], iteration_bounds = array<i64: 2>, scalar_prefetch = 0 : i64, scratch_operands = 0 : i64, tpu.core_type = #tpu.core_type<tc>, window_params = [{transform_indices = @transform_0, window_bounds = array<i64: 1, 8, 32>}, {transform_indices = @transform_1, window_bounds = array<i64: 1, 8, 32>}, {pipeline_mode = #tpu.pipeline_mode<synchronous>, transform_indices = @transform_2, window_bounds = array<i64: 32, 64>}, {pipeline_mode = #tpu.pipeline_mode<synchronous>, transform_indices = @transform_3, window_bounds = array<i64: 1, 64>}, {pipeline_mode = #tpu.pipeline_mode<synchronous>, transform_indices = @transform_4, window_bounds = array<i64: 32, 32>}, {pipeline_mode = #tpu.pipeline_mode<synchronous>, transform_indices = @transform_5, window_bounds = array<i64: 1, 32>}, {transform_indices = @transform_6, window_bounds = array<i64: 1, 8, 32>}]} {
    %c0 = arith.constant 0 : index
    %c0_0 = arith.constant 0 : index
    %c0_1 = arith.constant 0 : index
    %0 = vector.load %arg1[%c0, %c0_0, %c0_1] : memref<1x8x32xbf16, #tpu.memory_space<vmem>>, vector<1x8x32xbf16>
    %1 = vector.shape_cast %0 : vector<1x8x32xbf16> to vector<8x32xbf16>
    %c0_2 = arith.constant 0 : index
    %c0_3 = arith.constant 0 : index
    %c0_4 = arith.constant 0 : index
    %2 = vector.load %arg2[%c0_2, %c0_3, %c0_4] : memref<1x8x32xbf16, #tpu.memory_space<vmem>>, vector<1x8x32xbf16>
    %3 = vector.shape_cast %2 : vector<1x8x32xbf16> to vector<8x32xbf16>
    %4 = arith.addf %1, %3 : vector<8x32xbf16>
    %c0_5 = arith.constant 0 : index
    %c0_6 = arith.constant 0 : index
    %5 = vector.load %arg3[%c0_5, %c0_6] : memref<32x64xbf16, #tpu.memory_space<vmem>>, vector<32x64xbf16>
    %cst = arith.constant dense<0.000000e+00> : vector<8x64xf32>
    %6 = tpu.matmul %4, %5, %cst {dimension_numbers = #tpu.dot_dimension_numbers<[1], [0], [0], [1], [0, 0, 1, 1], [], []>} : vector<8x32xbf16>, vector<32x64xbf16>, vector<8x64xf32> -> vector<8x64xf32>
    %c0_7 = arith.constant 0 : index
    %c0_8 = arith.constant 0 : index
    %7 = vector.load %arg4[%c0_7, %c0_8] : memref<1x64xf32, #tpu.memory_space<vmem>>, vector<1x64xf32>
    %8 = vector.broadcast %7 : vector<1x64xf32> to vector<8x64xf32>
    %9 = arith.addf %6, %8 : vector<8x64xf32>
    %c0_9 = arith.constant 0 : index
    %c0_10 = arith.constant 0 : index
    %10 = vector.load %arg5[%c0_9, %c0_10] : memref<32x32xbf16, #tpu.memory_space<vmem>>, vector<32x32xbf16>
    %cst_11 = arith.constant dense<0.000000e+00> : vector<8x32xf32>
    %11 = tpu.matmul %1, %10, %cst_11 {dimension_numbers = #tpu.dot_dimension_numbers<[1], [0], [0], [1], [0, 0, 1, 1], [], []>} : vector<8x32xbf16>, vector<32x32xbf16>, vector<8x32xf32> -> vector<8x32xf32>
    %c0_12 = arith.constant 0 : index
    %c0_13 = arith.constant 0 : index
    %12 = vector.load %arg6[%c0_12, %c0_13] : memref<1x32xf32, #tpu.memory_space<vmem>>, vector<1x32xf32>
    %13 = vector.broadcast %12 : vector<1x32xf32> to vector<8x32xf32>
    %14 = arith.addf %11, %13 : vector<8x32xf32>
    %15 = vector.extract_strided_slice %9 {offsets = [0, 0], sizes = [8, 32], strides = [1, 1]} : vector<8x64xf32> to vector<8x32xf32>
    %16 = arith.truncf %15 : vector<8x32xf32> to vector<8x32xbf16>
    %17 = vector.extract_strided_slice %9 {offsets = [0, 32], sizes = [8, 32], strides = [1, 1]} : vector<8x64xf32> to vector<8x32xf32>
    %18 = arith.truncf %17 : vector<8x32xf32> to vector<8x32xbf16>
    %19 = arith.truncf %14 : vector<8x32xf32> to vector<8x32xbf16>
    %20 = vector.extract_strided_slice %16 {offsets = [0, 0], sizes = [8, 8], strides = [1, 1]} : vector<8x32xbf16> to vector<8x8xbf16>
    %21 = vector.extract_strided_slice %18 {offsets = [0, 0], sizes = [8, 8], strides = [1, 1]} : vector<8x32xbf16> to vector<8x8xbf16>
    %cst_14 = arith.constant dense<0.000000e+00> : vector<8x8xf32>
    %22 = tpu.matmul %20, %21, %cst_14 {dimension_numbers = #tpu.dot_dimension_numbers<[1], [1], [0], [0], [0, 0, 1, 0], [], []>} : vector<8x8xbf16>, vector<8x8xbf16>, vector<8x8xf32> -> vector<8x8xf32>
    %cst_15 = arith.constant dense<0xFF800000> : vector<8xf32>
    %23 = vector.multi_reduction <maximumf>, %22, %cst_15 [1] : vector<8x8xf32> to vector<8xf32>
    %24 = vector.shape_cast %23 : vector<8xf32> to vector<8x1xf32>
    %25 = vector.broadcast %24 : vector<8x1xf32> to vector<8x8xf32>
    %26 = arith.subf %22, %25 : vector<8x8xf32>
    %27 = math.exp %26 : vector<8x8xf32>
    %cst_16 = arith.constant dense<0.000000e+00> : vector<8xf32>
    %28 = vector.multi_reduction <add>, %27, %cst_16 [1] : vector<8x8xf32> to vector<8xf32>
    %29 = vector.shape_cast %28 : vector<8xf32> to vector<8x1xf32>
    %30 = tpu.reciprocal %29 {approx = true} : vector<8x1xf32> -> vector<8x1xf32>
    %31 = vector.broadcast %30 : vector<8x1xf32> to vector<8x8xf32>
    %32 = arith.mulf %27, %31 : vector<8x8xf32>
    %33 = arith.truncf %32 : vector<8x8xf32> to vector<8x8xbf16>
    %34 = vector.extract_strided_slice %19 {offsets = [0, 0], sizes = [8, 8], strides = [1, 1]} : vector<8x32xbf16> to vector<8x8xbf16>
    %cst_17 = arith.constant dense<0.000000e+00> : vector<8x8xf32>
    %35 = tpu.matmul %33, %34, %cst_17 {dimension_numbers = #tpu.dot_dimension_numbers<[1], [0], [0], [1], [0, 0, 1, 1], [], []>} : vector<8x8xbf16>, vector<8x8xbf16>, vector<8x8xf32> -> vector<8x8xf32>
    %36 = arith.truncf %35 : vector<8x8xf32> to vector<8x8xbf16>
    %c0_18 = arith.constant 0 : index
    %c0_19 = arith.constant 0 : index
    %c0_20 = arith.constant 0 : index
    %37 = vector.load %arg7[%c0_18, %c0_19, %c0_20] : memref<1x8x32xbf16, #tpu.memory_space<vmem>>, vector<1x8x8xbf16>
    %38 = vector.shape_cast %37 : vector<1x8x8xbf16> to vector<8x8xbf16>
    %39 = vector.shape_cast %36 : vector<8x8xbf16> to vector<1x8x8xbf16>
    tpu.vector_store %arg7[%c0_18, %c0_19, %c0_20], %39 {strides = array<i32>} : memref<1x8x32xbf16, #tpu.memory_space<vmem>>, vector<1x8x8xbf16>,
    %40 = vector.extract_strided_slice %16 {offsets = [0, 8], sizes = [8, 8], strides = [1, 1]} : vector<8x32xbf16> to vector<8x8xbf16>
    %41 = vector.extract_strided_slice %18 {offsets = [0, 8], sizes = [8, 8], strides = [1, 1]} : vector<8x32xbf16> to vector<8x8xbf16>
    %cst_21 = arith.constant dense<0.000000e+00> : vector<8x8xf32>
    %42 = tpu.matmul %40, %41, %cst_21 {dimension_numbers = #tpu.dot_dimension_numbers<[1], [1], [0], [0], [0, 0, 1, 0], [], []>} : vector<8x8xbf16>, vector<8x8xbf16>, vector<8x8xf32> -> vector<8x8xf32>
    %cst_22 = arith.constant dense<0xFF800000> : vector<8xf32>
    %43 = vector.multi_reduction <maximumf>, %42, %cst_22 [1] : vector<8x8xf32> to vector<8xf32>
    %44 = vector.shape_cast %43 : vector<8xf32> to vector<8x1xf32>
    %45 = vector.broadcast %44 : vector<8x1xf32> to vector<8x8xf32>
    %46 = arith.subf %42, %45 : vector<8x8xf32>
    %47 = math.exp %46 : vector<8x8xf32>
    %cst_23 = arith.constant dense<0.000000e+00> : vector<8xf32>
    %48 = vector.multi_reduction <add>, %47, %cst_23 [1] : vector<8x8xf32> to vector<8xf32>
    %49 = vector.shape_cast %48 : vector<8xf32> to vector<8x1xf32>
    %50 = tpu.reciprocal %49 {approx = true} : vector<8x1xf32> -> vector<8x1xf32>
    %51 = vector.broadcast %50 : vector<8x1xf32> to vector<8x8xf32>
    %52 = arith.mulf %47, %51 : vector<8x8xf32>
    %53 = arith.truncf %52 : vector<8x8xf32> to vector<8x8xbf16>
    %54 = vector.extract_strided_slice %19 {offsets = [0, 8], sizes = [8, 8], strides = [1, 1]} : vector<8x32xbf16> to vector<8x8xbf16>
    %cst_24 = arith.constant dense<0.000000e+00> : vector<8x8xf32>
    %55 = tpu.matmul %53, %54, %cst_24 {dimension_numbers = #tpu.dot_dimension_numbers<[1], [0], [0], [1], [0, 0, 1, 1], [], []>} : vector<8x8xbf16>, vector<8x8xbf16>, vector<8x8xf32> -> vector<8x8xf32>
    %56 = arith.truncf %55 : vector<8x8xf32> to vector<8x8xbf16>
    %c0_25 = arith.constant 0 : index
    %c0_26 = arith.constant 0 : index
    %c8 = arith.constant 8 : index
    %57 = vector.load %arg7[%c0_25, %c0_26, %c8] : memref<1x8x32xbf16, #tpu.memory_space<vmem>>, vector<1x8x8xbf16>
    %58 = vector.shape_cast %57 : vector<1x8x8xbf16> to vector<8x8xbf16>
    %59 = vector.shape_cast %56 : vector<8x8xbf16> to vector<1x8x8xbf16>
    tpu.vector_store %arg7[%c0_25, %c0_26, %c8], %59 {strides = array<i32>} : memref<1x8x32xbf16, #tpu.memory_space<vmem>>, vector<1x8x8xbf16>,
    %60 = vector.extract_strided_slice %16 {offsets = [0, 16], sizes = [8, 8], strides = [1, 1]} : vector<8x32xbf16> to vector<8x8xbf16>
    %61 = vector.extract_strided_slice %18 {offsets = [0, 16], sizes = [8, 8], strides = [1, 1]} : vector<8x32xbf16> to vector<8x8xbf16>
    %cst_27 = arith.constant dense<0.000000e+00> : vector<8x8xf32>
    %62 = tpu.matmul %60, %61, %cst_27 {dimension_numbers = #tpu.dot_dimension_numbers<[1], [1], [0], [0], [0, 0, 1, 0], [], []>} : vector<8x8xbf16>, vector<8x8xbf16>, vector<8x8xf32> -> vector<8x8xf32>
    %cst_28 = arith.constant dense<0xFF800000> : vector<8xf32>
    %63 = vector.multi_reduction <maximumf>, %62, %cst_28 [1] : vector<8x8xf32> to vector<8xf32>
    %64 = vector.shape_cast %63 : vector<8xf32> to vector<8x1xf32>
    %65 = vector.broadcast %64 : vector<8x1xf32> to vector<8x8xf32>
    %66 = arith.subf %62, %65 : vector<8x8xf32>
    %67 = math.exp %66 : vector<8x8xf32>
    %cst_29 = arith.constant dense<0.000000e+00> : vector<8xf32>
    %68 = vector.multi_reduction <add>, %67, %cst_29 [1] : vector<8x8xf32> to vector<8xf32>
    %69 = vector.shape_cast %68 : vector<8xf32> to vector<8x1xf32>
    %70 = tpu.reciprocal %69 {approx = true} : vector<8x1xf32> -> vector<8x1xf32>
    %71 = vector.broadcast %70 : vector<8x1xf32> to vector<8x8xf32>
    %72 = arith.mulf %67, %71 : vector<8x8xf32>
    %73 = arith.truncf %72 : vector<8x8xf32> to vector<8x8xbf16>
    %74 = vector.extract_strided_slice %19 {offsets = [0, 16], sizes = [8, 8], strides = [1, 1]} : vector<8x32xbf16> to vector<8x8xbf16>
    %cst_30 = arith.constant dense<0.000000e+00> : vector<8x8xf32>
    %75 = tpu.matmul %73, %74, %cst_30 {dimension_numbers = #tpu.dot_dimension_numbers<[1], [0], [0], [1], [0, 0, 1, 1], [], []>} : vector<8x8xbf16>, vector<8x8xbf16>, vector<8x8xf32> -> vector<8x8xf32>
    %76 = arith.truncf %75 : vector<8x8xf32> to vector<8x8xbf16>
    %c0_31 = arith.constant 0 : index
    %c0_32 = arith.constant 0 : index
    %c16 = arith.constant 16 : index
    %77 = vector.load %arg7[%c0_31, %c0_32, %c16] : memref<1x8x32xbf16, #tpu.memory_space<vmem>>, vector<1x8x8xbf16>
    %78 = vector.shape_cast %77 : vector<1x8x8xbf16> to vector<8x8xbf16>
    %79 = vector.shape_cast %76 : vector<8x8xbf16> to vector<1x8x8xbf16>
    tpu.vector_store %arg7[%c0_31, %c0_32, %c16], %79 {strides = array<i32>} : memref<1x8x32xbf16, #tpu.memory_space<vmem>>, vector<1x8x8xbf16>,
    %80 = vector.extract_strided_slice %16 {offsets = [0, 24], sizes = [8, 8], strides = [1, 1]} : vector<8x32xbf16> to vector<8x8xbf16>
    %81 = vector.extract_strided_slice %18 {offsets = [0, 24], sizes = [8, 8], strides = [1, 1]} : vector<8x32xbf16> to vector<8x8xbf16>
    %cst_33 = arith.constant dense<0.000000e+00> : vector<8x8xf32>
    %82 = tpu.matmul %80, %81, %cst_33 {dimension_numbers = #tpu.dot_dimension_numbers<[1], [1], [0], [0], [0, 0, 1, 0], [], []>} : vector<8x8xbf16>, vector<8x8xbf16>, vector<8x8xf32> -> vector<8x8xf32>
    %cst_34 = arith.constant dense<0xFF800000> : vector<8xf32>
    %83 = vector.multi_reduction <maximumf>, %82, %cst_34 [1] : vector<8x8xf32> to vector<8xf32>
    %84 = vector.shape_cast %83 : vector<8xf32> to vector<8x1xf32>
    %85 = vector.broadcast %84 : vector<8x1xf32> to vector<8x8xf32>
    %86 = arith.subf %82, %85 : vector<8x8xf32>
    %87 = math.exp %86 : vector<8x8xf32>
    %cst_35 = arith.constant dense<0.000000e+00> : vector<8xf32>
    %88 = vector.multi_reduction <add>, %87, %cst_35 [1] : vector<8x8xf32> to vector<8xf32>
    %89 = vector.shape_cast %88 : vector<8xf32> to vector<8x1xf32>
    %90 = tpu.reciprocal %89 {approx = true} : vector<8x1xf32> -> vector<8x1xf32>
    %91 = vector.broadcast %90 : vector<8x1xf32> to vector<8x8xf32>
    %92 = arith.mulf %87, %91 : vector<8x8xf32>
    %93 = arith.truncf %92 : vector<8x8xf32> to vector<8x8xbf16>
    %94 = vector.extract_strided_slice %19 {offsets = [0, 24], sizes = [8, 8], strides = [1, 1]} : vector<8x32xbf16> to vector<8x8xbf16>
    %cst_36 = arith.constant dense<0.000000e+00> : vector<8x8xf32>
    %95 = tpu.matmul %93, %94, %cst_36 {dimension_numbers = #tpu.dot_dimension_numbers<[1], [0], [0], [1], [0, 0, 1, 1], [], []>} : vector<8x8xbf16>, vector<8x8xbf16>, vector<8x8xf32> -> vector<8x8xf32>
    %96 = arith.truncf %95 : vector<8x8xf32> to vector<8x8xbf16>
    %c0_37 = arith.constant 0 : index
    %c0_38 = arith.constant 0 : index
    %c24 = arith.constant 24 : index
    %97 = vector.load %arg7[%c0_37, %c0_38, %c24] : memref<1x8x32xbf16, #tpu.memory_space<vmem>>, vector<1x8x8xbf16>
    %98 = vector.shape_cast %97 : vector<1x8x8xbf16> to vector<8x8xbf16>
    %99 = vector.shape_cast %96 : vector<8x8xbf16> to vector<1x8x8xbf16>
    tpu.vector_store %arg7[%c0_37, %c0_38, %c24], %99 {strides = array<i32>} : memref<1x8x32xbf16, #tpu.memory_space<vmem>>, vector<1x8x8xbf16>,
    return
  }
  func.func @transform_0(%arg0: i32) -> (i32, i32, i32) {
    %c0_i32 = arith.constant 0 : i32
    %c0_i32_0 = arith.constant 0 : i32
    %c0_i32_1 = arith.constant 0 : i32
    return %arg0, %c0_i32, %c0_i32_0 : i32, i32, i32
  }
  func.func @transform_1(%arg0: i32) -> (i32, i32, i32) {
    %c0_i32 = arith.constant 0 : i32
    %c0_i32_0 = arith.constant 0 : i32
    %c0_i32_1 = arith.constant 0 : i32
    return %arg0, %c0_i32, %c0_i32_0 : i32, i32, i32
  }
  func.func @transform_2(%arg0: i32) -> (i32, i32) {
    %c0_i32 = arith.constant 0 : i32
    %c0_i32_0 = arith.constant 0 : i32
    %c0_i32_1 = arith.constant 0 : i32
    return %c0_i32, %c0_i32_0 : i32, i32
  }
  func.func @transform_3(%arg0: i32) -> (i32, i32) {
    %c0_i32 = arith.constant 0 : i32
    %c0_i32_0 = arith.constant 0 : i32
    %c0_i32_1 = arith.constant 0 : i32
    return %c0_i32, %c0_i32_0 : i32, i32
  }
  func.func @transform_4(%arg0: i32) -> (i32, i32) {
    %c0_i32 = arith.constant 0 : i32
    %c0_i32_0 = arith.constant 0 : i32
    %c0_i32_1 = arith.constant 0 : i32
    return %c0_i32, %c0_i32_0 : i32, i32
  }
  func.func @transform_5(%arg0: i32) -> (i32, i32) {
    %c0_i32 = arith.constant 0 : i32
    %c0_i32_0 = arith.constant 0 : i32
    %c0_i32_1 = arith.constant 0 : i32
    return %c0_i32, %c0_i32_0 : i32, i32
  }
  func.func @transform_6(%arg0: i32) -> (i32, i32, i32) {
    %c0_i32 = arith.constant 0 : i32
    %c0_i32_0 = arith.constant 0 : i32
    %c0_i32_1 = arith.constant 0 : i32
    return %arg0, %c0_i32, %c0_i32_0 : i32, i32, i32
  }
}

module attributes {stable_mosaic.version = 11 : i64} {
  func.func @_epilogue_kernel(%arg0: i32, %arg1: memref<16x32xbf16, #tpu.memory_space<vmem>>, %arg2: memref<16x32xbf16, #tpu.memory_space<vmem>>, %arg3: memref<32x32xbf16, #tpu.memory_space<vmem>>, %arg4: memref<1x32xf32, #tpu.memory_space<vmem>>, %arg5: memref<1x32xf32, #tpu.memory_space<vmem>>, %arg6: memref<1x32xf32, #tpu.memory_space<vmem>>, %arg7: memref<32x64xbf16, #tpu.memory_space<vmem>>, %arg8: memref<1x64xf32, #tpu.memory_space<vmem>>, %arg9: memref<64x32xbf16, #tpu.memory_space<vmem>>, %arg10: memref<1x32xf32, #tpu.memory_space<vmem>>, %arg11: memref<1x32xf32, #tpu.memory_space<vmem>>, %arg12: memref<1x32xf32, #tpu.memory_space<vmem>>, %arg13: memref<16x32xbf16, #tpu.memory_space<vmem>>) attributes {dimension_semantics = [#tpu.dimension_semantics<parallel>], iteration_bounds = array<i64: 1>, scalar_prefetch = 0 : i64, scratch_operands = 0 : i64, tpu.core_type = #tpu.core_type<tc>, window_params = [{transform_indices = @transform_0, window_bounds = array<i64: 16, 32>}, {transform_indices = @transform_1, window_bounds = array<i64: 16, 32>}, {pipeline_mode = #tpu.pipeline_mode<synchronous>, transform_indices = @transform_2, window_bounds = array<i64: 32, 32>}, {pipeline_mode = #tpu.pipeline_mode<synchronous>, transform_indices = @transform_3, window_bounds = array<i64: 1, 32>}, {pipeline_mode = #tpu.pipeline_mode<synchronous>, transform_indices = @transform_4, window_bounds = array<i64: 1, 32>}, {pipeline_mode = #tpu.pipeline_mode<synchronous>, transform_indices = @transform_5, window_bounds = array<i64: 1, 32>}, {pipeline_mode = #tpu.pipeline_mode<synchronous>, transform_indices = @transform_6, window_bounds = array<i64: 32, 64>}, {pipeline_mode = #tpu.pipeline_mode<synchronous>, transform_indices = @transform_7, window_bounds = array<i64: 1, 64>}, {pipeline_mode = #tpu.pipeline_mode<synchronous>, transform_indices = @transform_8, window_bounds = array<i64: 64, 32>}, {pipeline_mode = #tpu.pipeline_mode<synchronous>, transform_indices = @transform_9, window_bounds = array<i64: 1, 32>}, {pipeline_mode = #tpu.pipeline_mode<synchronous>, transform_indices = @transform_10, window_bounds = array<i64: 1, 32>}, {pipeline_mode = #tpu.pipeline_mode<synchronous>, transform_indices = @transform_11, window_bounds = array<i64: 1, 32>}, {transform_indices = @transform_12, window_bounds = array<i64: 16, 32>}]} {
    %c0 = arith.constant 0 : index
    %c0_0 = arith.constant 0 : index
    %0 = vector.load %arg1[%c0, %c0_0] : memref<16x32xbf16, #tpu.memory_space<vmem>>, vector<16x32xbf16>
    %c0_1 = arith.constant 0 : index
    %c0_2 = arith.constant 0 : index
    %1 = vector.load %arg3[%c0_1, %c0_2] : memref<32x32xbf16, #tpu.memory_space<vmem>>, vector<32x32xbf16>
    %cst = arith.constant dense<0.000000e+00> : vector<16x32xf32>
    %2 = tpu.matmul %0, %1, %cst {dimension_numbers = #tpu.dot_dimension_numbers<[1], [0], [0], [1], [0, 0, 1, 1], [], []>} : vector<16x32xbf16>, vector<32x32xbf16>, vector<16x32xf32> -> vector<16x32xf32>
    %c0_3 = arith.constant 0 : index
    %c0_4 = arith.constant 0 : index
    %3 = vector.load %arg4[%c0_3, %c0_4] : memref<1x32xf32, #tpu.memory_space<vmem>>, vector<1x32xf32>
    %4 = vector.broadcast %3 : vector<1x32xf32> to vector<16x32xf32>
    %5 = arith.addf %2, %4 : vector<16x32xf32>
    %c0_5 = arith.constant 0 : index
    %c0_6 = arith.constant 0 : index
    %6 = vector.load %arg2[%c0_5, %c0_6] : memref<16x32xbf16, #tpu.memory_space<vmem>>, vector<16x32xbf16>
    %7 = arith.extf %6 : vector<16x32xbf16> to vector<16x32xf32>
    %8 = arith.addf %7, %5 : vector<16x32xf32>
    %cst_7 = arith.constant dense<0.000000e+00> : vector<16xf32>
    %9 = vector.multi_reduction <add>, %8, %cst_7 [1] : vector<16x32xf32> to vector<16xf32>
    %10 = vector.shape_cast %9 : vector<16xf32> to vector<16x1xf32>
    %cst_8 = arith.constant 3.200000e+01 : f32
    %11 = vector.broadcast %cst_8 : f32 to vector<16x1xf32>
    %12 = arith.divf %10, %11 : vector<16x1xf32>
    %13 = vector.broadcast %12 : vector<16x1xf32> to vector<16x32xf32>
    %14 = arith.subf %8, %13 : vector<16x32xf32>
    %15 = arith.mulf %14, %14 : vector<16x32xf32>
    %cst_9 = arith.constant dense<0.000000e+00> : vector<16xf32>
    %16 = vector.multi_reduction <add>, %15, %cst_9 [1] : vector<16x32xf32> to vector<16xf32>
    %17 = vector.shape_cast %16 : vector<16xf32> to vector<16x1xf32>
    %cst_10 = arith.constant 3.200000e+01 : f32
    %18 = vector.broadcast %cst_10 : f32 to vector<16x1xf32>
    %19 = arith.divf %17, %18 : vector<16x1xf32>
    %20 = vector.broadcast %12 : vector<16x1xf32> to vector<16x32xf32>
    %21 = arith.subf %8, %20 : vector<16x32xf32>
    %cst_11 = arith.constant 9.99999974E-6 : f32
    %22 = vector.broadcast %cst_11 : f32 to vector<16x1xf32>
    %23 = arith.addf %19, %22 : vector<16x1xf32>
    %24 = math.rsqrt %23 : vector<16x1xf32>
    %25 = vector.broadcast %24 : vector<16x1xf32> to vector<16x32xf32>
    %26 = arith.mulf %21, %25 : vector<16x32xf32>
    %c0_12 = arith.constant 0 : index
    %c0_13 = arith.constant 0 : index
    %27 = vector.load %arg5[%c0_12, %c0_13] : memref<1x32xf32, #tpu.memory_space<vmem>>, vector<1x32xf32>
    %28 = vector.broadcast %27 : vector<1x32xf32> to vector<16x32xf32>
    %29 = arith.mulf %26, %28 : vector<16x32xf32>
    %c0_14 = arith.constant 0 : index
    %c0_15 = arith.constant 0 : index
    %30 = vector.load %arg6[%c0_14, %c0_15] : memref<1x32xf32, #tpu.memory_space<vmem>>, vector<1x32xf32>
    %31 = vector.broadcast %30 : vector<1x32xf32> to vector<16x32xf32>
    %32 = arith.addf %29, %31 : vector<16x32xf32>
    %33 = arith.truncf %32 : vector<16x32xf32> to vector<16x32xbf16>
    %c0_16 = arith.constant 0 : index
    %c0_17 = arith.constant 0 : index
    %34 = vector.load %arg7[%c0_16, %c0_17] : memref<32x64xbf16, #tpu.memory_space<vmem>>, vector<32x64xbf16>
    %cst_18 = arith.constant dense<0.000000e+00> : vector<16x64xf32>
    %35 = tpu.matmul %33, %34, %cst_18 {dimension_numbers = #tpu.dot_dimension_numbers<[1], [0], [0], [1], [0, 0, 1, 1], [], []>} : vector<16x32xbf16>, vector<32x64xbf16>, vector<16x64xf32> -> vector<16x64xf32>
    %c0_19 = arith.constant 0 : index
    %c0_20 = arith.constant 0 : index
    %36 = vector.load %arg8[%c0_19, %c0_20] : memref<1x64xf32, #tpu.memory_space<vmem>>, vector<1x64xf32>
    %37 = vector.broadcast %36 : vector<1x64xf32> to vector<16x64xf32>
    %38 = arith.addf %35, %37 : vector<16x64xf32>
    %cst_21 = arith.constant 0.000000e+00 : f32
    %39 = vector.broadcast %cst_21 : f32 to vector<16x64xf32>
    %40 = arith.maximumf %38, %39 : vector<16x64xf32>
    %41 = arith.truncf %40 : vector<16x64xf32> to vector<16x64xbf16>
    %c0_22 = arith.constant 0 : index
    %c0_23 = arith.constant 0 : index
    %42 = vector.load %arg9[%c0_22, %c0_23] : memref<64x32xbf16, #tpu.memory_space<vmem>>, vector<64x32xbf16>
    %cst_24 = arith.constant dense<0.000000e+00> : vector<16x32xf32>
    %43 = tpu.matmul %41, %42, %cst_24 {dimension_numbers = #tpu.dot_dimension_numbers<[1], [0], [0], [1], [0, 0, 1, 1], [], []>} : vector<16x64xbf16>, vector<64x32xbf16>, vector<16x32xf32> -> vector<16x32xf32>
    %c0_25 = arith.constant 0 : index
    %c0_26 = arith.constant 0 : index
    %44 = vector.load %arg10[%c0_25, %c0_26] : memref<1x32xf32, #tpu.memory_space<vmem>>, vector<1x32xf32>
    %45 = vector.broadcast %44 : vector<1x32xf32> to vector<16x32xf32>
    %46 = arith.addf %43, %45 : vector<16x32xf32>
    %47 = arith.addf %32, %46 : vector<16x32xf32>
    %cst_27 = arith.constant dense<0.000000e+00> : vector<16xf32>
    %48 = vector.multi_reduction <add>, %47, %cst_27 [1] : vector<16x32xf32> to vector<16xf32>
    %49 = vector.shape_cast %48 : vector<16xf32> to vector<16x1xf32>
    %cst_28 = arith.constant 3.200000e+01 : f32
    %50 = vector.broadcast %cst_28 : f32 to vector<16x1xf32>
    %51 = arith.divf %49, %50 : vector<16x1xf32>
    %52 = vector.broadcast %51 : vector<16x1xf32> to vector<16x32xf32>
    %53 = arith.subf %47, %52 : vector<16x32xf32>
    %54 = arith.mulf %53, %53 : vector<16x32xf32>
    %cst_29 = arith.constant dense<0.000000e+00> : vector<16xf32>
    %55 = vector.multi_reduction <add>, %54, %cst_29 [1] : vector<16x32xf32> to vector<16xf32>
    %56 = vector.shape_cast %55 : vector<16xf32> to vector<16x1xf32>
    %cst_30 = arith.constant 3.200000e+01 : f32
    %57 = vector.broadcast %cst_30 : f32 to vector<16x1xf32>
    %58 = arith.divf %56, %57 : vector<16x1xf32>
    %59 = vector.broadcast %51 : vector<16x1xf32> to vector<16x32xf32>
    %60 = arith.subf %47, %59 : vector<16x32xf32>
    %cst_31 = arith.constant 9.99999974E-6 : f32
    %61 = vector.broadcast %cst_31 : f32 to vector<16x1xf32>
    %62 = arith.addf %58, %61 : vector<16x1xf32>
    %63 = math.rsqrt %62 : vector<16x1xf32>
    %64 = vector.broadcast %63 : vector<16x1xf32> to vector<16x32xf32>
    %65 = arith.mulf %60, %64 : vector<16x32xf32>
    %c0_32 = arith.constant 0 : index
    %c0_33 = arith.constant 0 : index
    %66 = vector.load %arg11[%c0_32, %c0_33] : memref<1x32xf32, #tpu.memory_space<vmem>>, vector<1x32xf32>
    %67 = vector.broadcast %66 : vector<1x32xf32> to vector<16x32xf32>
    %68 = arith.mulf %65, %67 : vector<16x32xf32>
    %c0_34 = arith.constant 0 : index
    %c0_35 = arith.constant 0 : index
    %69 = vector.load %arg12[%c0_34, %c0_35] : memref<1x32xf32, #tpu.memory_space<vmem>>, vector<1x32xf32>
    %70 = vector.broadcast %69 : vector<1x32xf32> to vector<16x32xf32>
    %71 = arith.addf %68, %70 : vector<16x32xf32>
    %72 = arith.truncf %71 : vector<16x32xf32> to vector<16x32xbf16>
    %c0_36 = arith.constant 0 : index
    %c0_37 = arith.constant 0 : index
    %73 = vector.load %arg13[%c0_36, %c0_37] : memref<16x32xbf16, #tpu.memory_space<vmem>>, vector<16x32xbf16>
    tpu.vector_store %arg13[%c0_36, %c0_37], %72 {strides = array<i32>} : memref<16x32xbf16, #tpu.memory_space<vmem>>, vector<16x32xbf16>,
    return
  }
  func.func @transform_0(%arg0: i32) -> (i32, i32) {
    %c0_i32 = arith.constant 0 : i32
    %c0_i32_0 = arith.constant 0 : i32
    return %arg0, %c0_i32 : i32, i32
  }
  func.func @transform_1(%arg0: i32) -> (i32, i32) {
    %c0_i32 = arith.constant 0 : i32
    %c0_i32_0 = arith.constant 0 : i32
    return %arg0, %c0_i32 : i32, i32
  }
  func.func @transform_2(%arg0: i32) -> (i32, i32) {
    %c0_i32 = arith.constant 0 : i32
    %c0_i32_0 = arith.constant 0 : i32
    %c0_i32_1 = arith.constant 0 : i32
    return %c0_i32, %c0_i32_0 : i32, i32
  }
  func.func @transform_3(%arg0: i32) -> (i32, i32) {
    %c0_i32 = arith.constant 0 : i32
    %c0_i32_0 = arith.constant 0 : i32
    %c0_i32_1 = arith.constant 0 : i32
    return %c0_i32, %c0_i32_0 : i32, i32
  }
  func.func @transform_4(%arg0: i32) -> (i32, i32) {
    %c0_i32 = arith.constant 0 : i32
    %c0_i32_0 = arith.constant 0 : i32
    %c0_i32_1 = arith.constant 0 : i32
    return %c0_i32, %c0_i32_0 : i32, i32
  }
  func.func @transform_5(%arg0: i32) -> (i32, i32) {
    %c0_i32 = arith.constant 0 : i32
    %c0_i32_0 = arith.constant 0 : i32
    %c0_i32_1 = arith.constant 0 : i32
    return %c0_i32, %c0_i32_0 : i32, i32
  }
  func.func @transform_6(%arg0: i32) -> (i32, i32) {
    %c0_i32 = arith.constant 0 : i32
    %c0_i32_0 = arith.constant 0 : i32
    %c0_i32_1 = arith.constant 0 : i32
    return %c0_i32, %c0_i32_0 : i32, i32
  }
  func.func @transform_7(%arg0: i32) -> (i32, i32) {
    %c0_i32 = arith.constant 0 : i32
    %c0_i32_0 = arith.constant 0 : i32
    %c0_i32_1 = arith.constant 0 : i32
    return %c0_i32, %c0_i32_0 : i32, i32
  }
  func.func @transform_8(%arg0: i32) -> (i32, i32) {
    %c0_i32 = arith.constant 0 : i32
    %c0_i32_0 = arith.constant 0 : i32
    %c0_i32_1 = arith.constant 0 : i32
    return %c0_i32, %c0_i32_0 : i32, i32
  }
  func.func @transform_9(%arg0: i32) -> (i32, i32) {
    %c0_i32 = arith.constant 0 : i32
    %c0_i32_0 = arith.constant 0 : i32
    %c0_i32_1 = arith.constant 0 : i32
    return %c0_i32, %c0_i32_0 : i32, i32
  }
  func.func @transform_10(%arg0: i32) -> (i32, i32) {
    %c0_i32 = arith.constant 0 : i32
    %c0_i32_0 = arith.constant 0 : i32
    %c0_i32_1 = arith.constant 0 : i32
    return %c0_i32, %c0_i32_0 : i32, i32
  }
  func.func @transform_11(%arg0: i32) -> (i32, i32) {
    %c0_i32 = arith.constant 0 : i32
    %c0_i32_0 = arith.constant 0 : i32
    %c0_i32_1 = arith.constant 0 : i32
    return %c0_i32, %c0_i32_0 : i32, i32
  }
  func.func @transform_12(%arg0: i32) -> (i32, i32) {
    %c0_i32 = arith.constant 0 : i32
    %c0_i32_0 = arith.constant 0 : i32
    return %arg0, %c0_i32 : i32, i32
  }
}

</mosaic_0001>

<bundles_post_ra>
// kernel: transformer_encoder_forward.5
= control target key start
LH: loop header
LB: loop body
LE: loop exit
PB: predicated region body
PF: predicated region fallthrough
CT: control target
= control target key end

     0   :  { %v469_v0 = vmov 0.0   ;;  %vm470_vm0 = vmmov 0   ;;  %vm72_vm1 = vcmask 261120   ;;  %vm278_vm2 = vcmask 523264   ;;  %s614_s2 = inlined_call_operand.vmem [shape: bf16[32,32], index: 2, kind: input, shape index: {}]   ;;  %s615_s0 = inlined_call_operand.vmem [shape: bf16[16,32], index: 0, kind: input, shape index: {}]   ;;  %s616_s1 = inlined_call_operand.vmem [shape: bf16[16,32], index: 1, kind: input, shape index: {}]   ;;  %s617_s3 = inlined_call_operand.vmem [shape: f32[1,32], index: 3, kind: input, shape index: {}]   ;;  %s618_s6 = inlined_call_operand.vmem [shape: bf16[32,64], index: 6, kind: input, shape index: {}]   ;;  %s619_s8 = inlined_call_operand.vmem [shape: bf16[64,32], index: 8, kind: input, shape index: {}]   ;;  %s620_s4 = inlined_call_operand.vmem [shape: f32[1,32], index: 4, kind: input, shape index: {}]   ;;  %s621_s5 = inlined_call_operand.vmem [shape: f32[1,32], index: 5, kind: input, shape index: {}]   ;;  %s622_s7 = inlined_call_operand.vmem [shape: f32[1,64], index: 7, kind: input, shape index: {}]   ;;  %s623_s9 = inlined_call_operand.vmem [shape: f32[1,32], index: 9, kind: input, shape index: {}]   ;;  %s624_s10 = inlined_call_operand.vmem [shape: f32[1,32], index: 10, kind: input, shape index: {}]   ;;  %s625_s11 = inlined_call_operand.vmem [shape: f32[1,32], index: 11, kind: input, shape index: {}]   ;;  %s626_s12 = inlined_call_operand.vmem [shape: bf16[16,32], index: 12, kind: output, shape index: {}]  }
   0x1   :  { %422 = vmatprep.subr.bf16.mxu1 %v469_v0  ;;  %v452_v1 = vld [vmem:[%s614_s2] sm:$0xff]   ;;  %426 = vmatprep.mubr.msk.bf16.mxu1 %vm470_vm0, %v469_v0  ;;  %v453_v2 = vld [vmem:[%s614_s2 + $0x8] sm:$0xff]   ;;  %v459_v49 = vld [vmem:[%s619_s8 + $0x10] sm:$0xff]   ;;  %vm377_vm3 = vcmask 257024  }
   0x2   :  { %438 = vmatprep.subr.bf16.mxu0 %v469_v0  ;;  %446 = vmatprep.mubr.msk.bf16.mxu0 %vm470_vm0, %v469_v0  ;;  %v454_v3 = vld [vmem:[%s615_s0] sm:$0xff]   ;;  %v456_v29 = vld [vmem:[%s618_s6 + $0x8] sm:$0xff]   ;;  %v460_v50 = vld [vmem:[%s619_s8 + $0x18] sm:$0xff]  }
   0x3   :  { %423 = vmatpush3.bf16.msra.mxu1 %v452_v1  ;;  %v408_v4 = vld [vmem:[%s616_s1] sm:$0xff]   ;;  %v458_v31 = vld [vmem:[%s619_s8 + $0x8] sm:$0xff]  }
   0x4   :  { %424 = vmatprep.subr.bf16.mxu1 %v469_v0  ;;  %v384_v5 = vld [vmem:[%s617_s3] ss:$0 sm:$0xff]  ;;  %v409_v6 = vunpack.c.l.bf16 %v408_v4  ;;  %v410_v10 = vunpack.c.h.bf16 %v408_v4 }
   0x5   :  { %v455_v28 = vld [vmem:[%s618_s6] sm:$0xff]  }
   0x6   :  { %v457_v30 = vld [vmem:[%s619_s8] sm:$0xff]  }
   0x7   :  { %425 = vmatpush3.bf16.msra.mxu1 %v453_v2  ;;  %439 = vmatpush3.bf16.msra.mxu0 %v457_v30  ;;  %v389_v40 = vld [vmem:[%s620_s4] ss:$0 sm:$0xff] }
   0x8   :  { %430 = vmatprep.subr.bf16.mxu1 %v469_v0  ;;  %440 = vmatprep.subr.bf16.mxu0 %v469_v0  ;;  %v390_v44 = vld [vmem:[%s621_s5] ss:$0 sm:$0xff] }
   0x9   :  { %v391_v51 = vld [vmem:[%s622_s7] ss:$0 sm:$0xff] }
   0xa   :  { %427 = vmatmul.mubr.msk.bf16.vlgmr.msra.gmra.mrb[0].mxu1 %vm72_vm1, %v454_v3  ;;  %v395_v61 = vld [vmem:[%s623_s9] ss:$0 sm:$0xff] }
   0xb   :  { %434 = vmatprep.mubr.msk.bf16.mxu1 %vm470_vm0, %v469_v0  ;;  %431 = vmatpush3.bf16.msra.mxu1 %v455_v28  ;;  %v402_v28 = vld [vmem:[%s625_s11] ss:$0 sm:$0xff] }
   0xc   :  { %432 = vmatprep.subr.bf16.mxu1 %v469_v0  ;;  %441 = vmatpush3.bf16.msra.mxu0 %v458_v31 }
   0xd   :  { %442 = vmatprep.subr.bf16.mxu0 %v469_v0 }
   0xf   :  { %433 = vmatpush3.bf16.msra.mxu1 %v456_v29 }
  0x10   :  { %443 = vmatpush3.bf16.msra.mxu0 %v459_v49 }
  0x11   :  { %444 = vmatprep.subr.bf16.mxu0 %v469_v0 }
  0x14   :  { %445 = vmatpush3.bf16.msra.mxu0 %v460_v50 }
  0xdd   :  { %v110_v7 = vpop.f32.mrb[0].mxu1 }
  0xde   :  { %v111_v8 = vadd.f32 %v384_v5, %v110_v7  ;;  %v428_v9 = vpop.f32.mrb[1].mxu1 }
  0xdf   :  { %v113_v11 = vpop.f32.mrb[2].mxu1 }
  0xe0   :  { %v114_v12 = vadd.f32 %v384_v5, %v113_v11  ;;  %v429_v13 = vpop.f32.mrb[3].mxu1  ;;  %v121_v14 = vadd.f32 %v409_v6, %v111_v8 }
  0xe2   :  { %v123_v15 = vsel %vm72_vm1, %v121_v14, 0.0  ;;  %v122_v16 = vadd.f32 %v410_v10, %v114_v12 }
  0xe3   :  { %124 = vadd.xlane.f32.xlu0 %v123_v15 }
  0xe4   :  { %v126_v17 = vsel %vm72_vm1, %v122_v16, 0.0 }
  0xe7   :  { %127 = vadd.xlane.f32.xlu0 %v126_v17 }
 0x170   :  { %v125_v18 = vpop.xlane.xlu0 %124 }
 0x171   :  { %v130_v19 = vmul.f32 0.03125, %v125_v18 }
 0x173   :  { %v132_v20 = vsub.f32 %v121_v14, %v130_v19 }
 0x174   :  { %v128_v21 = vpop.xlane.xlu0 %127 }
 0x175   :  { %v131_v22 = vmul.f32 0.03125, %v128_v21  ;;  %v134_v23 = vmul.f32 %v132_v20, %v132_v20 }
 0x177   :  { %v133_v24 = vsub.f32 %v122_v16, %v131_v22  ;;  %v136_v25 = vsel %vm72_vm1, %v134_v23, 0.0 }
 0x178   :  { %137 = vadd.xlane.f32.xlu1 %v136_v25  ;;  %v401_v25 = vld [vmem:[%s624_s10] ss:$0 sm:$0xff] }
 0x179   :  { %v135_v26 = vmul.f32 %v133_v24, %v133_v24 }
 0x17b   :  { %v139_v27 = vsel %vm72_vm1, %v135_v26, 0.0 }
 0x17c   :  { %140 = vadd.xlane.f32.xlu1 %v139_v27 }
 0x205   :  { %v138_v32 = vpop.xlane.xlu1 %137 }
 0x206   :  { %v142_v33 = vmul.f32 0.03125, %v138_v32 }
 0x208   :  { %v144_v34 = vadd.f32 1e-05, %v142_v33 }
 0x209   :  { %v141_v35 = vpop.xlane.xlu1 %140 }
 0x20a   :  { %461 = vrsqrt.f32 %v144_v34  ;;  %v143_v36 = vmul.f32 0.03125, %v141_v35 }
 0x20c   :  { %v145_v37 = vadd.f32 1e-05, %v143_v36 }
 0x20e   :  { %463 = vrsqrt.f32 %v145_v37 }
 0x214   :  { %v462_v38 = vpop.eup %461 }
 0x215   :  { %v148_v39 = vmul.f32 %v462_v38, %v132_v20 }
 0x217   :  { %v157_v42 = vmul.f32 %v389_v40, %v148_v39 }
 0x218   :  { %v464_v41 = vpop.eup %463 }
 0x219   :  { %v149_v43 = vmul.f32 %v464_v41, %v133_v24  ;;  %v166_v46 = vadd.f32 %v390_v44, %v157_v42 }
 0x21b   :  { %v158_v45 = vmul.f32 %v389_v40, %v149_v43 }
 0x21d   :  { %v167_v47 = vadd.f32 %v390_v44, %v158_v45 }
 0x21f   :  { %v168_v48 = vpack.c.bf16 %v167_v47, %v166_v46 }
 0x221   :  { %435 = vmatmul.mubr.msk.bf16.vlgmr.msra.gmra.mrb[4].mxu1 %vm72_vm1, %v168_v48 }
 0x2f4   :  { %v229_v52 = vpop.f32.mrb[4].mxu1 }
 0x2f5   :  { %v230_v53 = vadd.f32 %v391_v51, %v229_v52  ;;  %v436_v54 = vpop.f32.mrb[5].mxu1 }
 0x2f6   :  { %v232_v55 = vpop.f32.mrb[6].mxu1 }
 0x2f7   :  { %v233_v56 = vadd.f32 %v391_v51, %v232_v55  ;;  %v437_v57 = vpop.f32.mrb[7].mxu1  ;;  %v236_v58 = vmax.f32 %v230_v53, 0.0 }
 0x2f9   :  { %v237_v59 = vmax.f32 %v233_v56, 0.0 }
 0x2fb   :  { %v238_v60 = vpack.c.bf16 %v237_v59, %v236_v58 }
 0x2fd   :  { %447 = vmatmul.mubr.msk.bf16.vlgmr.msra.gmra.mrb[0].mxu0 %vm278_vm2, %v238_v60 }
 0x3d0   :  { %v316_v62 = vpop.f32.mrb[0].mxu0 }
 0x3d1   :  { %v317_v63 = vadd.f32 %v395_v61, %v316_v62  ;;  %v448_v0 = vpop.f32.mrb[1].mxu0 }
 0x3d2   :  { %v319_v1 = vpop.f32.mrb[2].mxu0 }
 0x3d3   :  { %v320_v2 = vadd.f32 %v395_v61, %v319_v1  ;;  %v449_v3 = vpop.f32.mrb[3].mxu0  ;;  %v323_v4 = vadd.f32 %v317_v63, %v166_v46 }
 0x3d5   :  { %v325_v5 = vsel %vm72_vm1, %v323_v4, 0.0  ;;  %v324_v6 = vadd.f32 %v320_v2, %v167_v47 }
 0x3d6   :  { %326 = vadd.xlane.f32.xlu0 %v325_v5 }
 0x3d7   :  { %v328_v7 = vsel %vm72_vm1, %v324_v6, 0.0 }
 0x3d8   :  { %329 = vadd.xlane.f32.xlu1 %v328_v7 }
 0x463   :  { %v327_v8 = vpop.xlane.xlu0 %326 }
 0x464   :  { %v331_v9 = vmul.f32 0.03125, %v327_v8 }
 0x465   :  { %v330_v10 = vpop.xlane.xlu1 %329 }
 0x466   :  { %v333_v11 = vsub.f32 %v323_v4, %v331_v9  ;;  %v332_v12 = vmul.f32 0.03125, %v330_v10 }
 0x468   :  { %v334_v13 = vsub.f32 %v324_v6, %v332_v12  ;;  %v335_v14 = vmul.f32 %v333_v11, %v333_v11 }
 0x46a   :  { %v337_v15 = vsel %vm72_vm1, %v335_v14, 0.0  ;;  %v336_v16 = vmul.f32 %v334_v13, %v334_v13 }
 0x46b   :  { %338 = vadd.xlane.f32.xlu0 %v337_v15 }
 0x46c   :  { %v340_v17 = vsel %vm72_vm1, %v336_v16, 0.0 }
 0x46d   :  { %341 = vadd.xlane.f32.xlu1 %v340_v17 }
 0x4f8   :  { %v339_v18 = vpop.xlane.xlu0 %338 }
 0x4f9   :  { %v343_v19 = vmul.f32 0.03125, %v339_v18 }
 0x4fa   :  { %v342_v20 = vpop.xlane.xlu1 %341 }
 0x4fb   :  { %v345_v21 = vadd.f32 1e-05, %v343_v19  ;;  %v344_v22 = vmul.f32 0.03125, %v342_v20 }
 0x4fd   :  { %465 = vrsqrt.f32 %v345_v21  ;;  %v346_v23 = vadd.f32 1e-05, %v344_v22 }
 0x4ff   :  { %467 = vrsqrt.f32 %v346_v23 }
 0x507   :  { %v466_v24 = vpop.eup %465 }
 0x508   :  { %v349_v26 = vmul.f32 %v466_v24, %v333_v11 }
 0x509   :  { %v468_v27 = vpop.eup %467 }
 0x50a   :  { %v358_v29 = vmul.f32 %v401_v25, %v349_v26  ;;  %v350_v30 = vmul.f32 %v468_v27, %v334_v13 }
 0x50c   :  { %v367_v31 = vadd.f32 %v402_v28, %v358_v29  ;;  %v359_v32 = vmul.f32 %v401_v25, %v350_v30 }
 0x50e   :  { %v405_v33 = vpack.c.bf16 %v367_v31, %v367_v31  ;;  %v368_v34 = vadd.f32 %v402_v28, %v359_v32 }
 0x510   :  { %378 = vst.msk [vmem:[%s626_s12] sm:$0xf] %vm377_vm3, %v405_v33  ;;  %v406_v35 = vpack.c.bf16 %v368_v34, %v368_v34 }
 0x512   :  { %379 = vst.msk [vmem:[%s626_s12 + $0x4] sm:$0xf] %vm377_vm3, %v406_v35 }

// kernel: transformer_encoder_forward.4
= control target key start
LH: loop header
LB: loop body
LE: loop exit
PB: predicated region body
PF: predicated region fallthrough
CT: control target
= control target key end

     0   :  { %s1151_s21 = smov 0   ;;  %s1264_s0 = inlined_call_operand.vmem [shape: bf16[2,8,32], index: 0, kind: input, shape index: {}]   ;;  %s1265_s1 = inlined_call_operand.vmem [shape: bf16[2,8,32], index: 1, kind: input, shape index: {}]   ;;  %s1266_s2 = inlined_call_operand.vmem [shape: bf16[32,64], index: 2, kind: input, shape index: {}]   ;;  %s1267_s3 = inlined_call_operand.vmem [shape: f32[1,64], index: 3, kind: input, shape index: {}]   ;;  %s1268_s4 = inlined_call_operand.vmem [shape: bf16[32,32], index: 4, kind: input, shape index: {}]   ;;  %s1269_s5 = inlined_call_operand.vmem [shape: f32[1,32], index: 5, kind: input, shape index: {}]   ;;  %s1270_s6 = inlined_call_operand.vmem [shape: bf16[2,8,32], index: 6, kind: output, shape index: {}]  }
   0x1 LB: > { %s938_s22 = sadd.s32 4294967295, %s1102_s21   ;;  %p942_p0 = scmp.ge.s32.totalorder %s1102_s21, 1  ;;  %s1102_s21 = sphi %s1151_s21, %s16_s21  }
   0x2   : > { %p220_p1 = scmp.lt.s32.totalorder %s1102_s21, 3 }
   0x4   : > { %p221_p2 = pnand %p942_p0, %p220_p1 }
   0x5   : > { %v1076_v0 = vld [vmem:[%s1266_s2] sm:$0xff] (!%p221_p2)   ;;  %v1104_v1 = vmov (!%p221_p2), 0.0   ;;  %v1077_v2 = vld [vmem:[%s1266_s2 + $0x8] sm:$0xff] (!%p221_p2)   ;;  %vm1105_vm0 = vmmov (!%p221_p2), 0   ;;  %p252_p3 = scmp.lt.s32.totalorder (!%p221_p2), %s938_s22, 1  ;;  %vm291_vm1 = vcmask (!%p221_p2), 261120  }
   0x6   : > { %224 = sbr.rel (%p221_p2) target bundleno = 1278 (0x4fe), region = 44  ;;  %992 = vmatprep.subr.bf16.mxu0 (!%p221_p2), %v1104_v1  ;;  %1000 = vmatprep.subr.bf16.mxu1 (!%p221_p2), %v1104_v1  ;;  %v946_v6 = vld [vmem:[%s1267_s3] ss:$0 sm:$0xff] (!%p221_p2)  ;;  %s1106_s12 = smov (!%p221_p2), 120   ;;  %v1079_v14 = vld [vmem:[%s1268_s4 + $0x8] sm:$0xff] (!%p221_p2)   ;;  %vm406_vm2 = vcmask (!%p221_p2), 64512  }
   0x7   : > { %993 = vmatpush3.bf16.msra.mxu0 (!%p221_p2), %v1076_v0  ;;  %996 = vmatprep.mubr.msk.bf16.mxu0 (!%p221_p2), %vm1105_vm0, %v1104_v1  ;;  %s1107_s13 = smov (!%p221_p2), 96   ;;  %s1108_s14 = smov (!%p221_p2), 80   ;;  %v1078_v13 = vld [vmem:[%s1268_s4] sm:$0xff] (!%p221_p2)   ;;  %vm468_vm3 = vcmask (!%p221_p2), 1043456   ;;  %vm513_vm4 = vcmask (!%p221_p2), 60416   ;;  %vm633_vm5 = vcmask (!%p221_p2), 126016  }
   0x8   : > { %994 = vmatprep.subr.bf16.mxu0 (!%p221_p2), %v1104_v1  ;;  %1004 = vmatprep.mubr.msk.bf16.mxu1 (!%p221_p2), %vm1105_vm0, %v1104_v1  ;;  %s1109_s15 = smov (!%p221_p2), 88   ;;  %s1110_s16 = smov (!%p221_p2), 72   ;;  %v950_v46 = vld [vmem:[%s1269_s5] ss:$0 sm:$0xff] (!%p221_p2)  ;;  %vm752_vm6 = vcmask (!%p221_p2), 191616   ;;  %vm871_vm7 = vcmask (!%p221_p2), 257216  }
   0x9   : > { %s1111_s17 = smov (!%p221_p2), 112   ;;  %s1112_s18 = smov (!%p221_p2), 104   ;;  %1001 = vmatpush3.bf16.msra.mxu1 (!%p221_p2), %v1078_v13 }
   0xa   : > { %1002 = vmatprep.subr.bf16.mxu1 (!%p221_p2), %v1104_v1  ;;  %s1115_s7 = smov (!%p221_p2), 24  }
   0xb   : > { %995 = vmatpush3.bf16.msra.mxu0 (!%p221_p2), %v1077_v2 }
   0xc   : > { %1008 = vmatprep.subr.bf16.mxu0 (!%p221_p2), %v1104_v1 }
   0xd   : > { %s1272_s22 = smov (!%p252_p3, %s938_s22), 1  ;;  %1003 = vmatpush3.bf16.msra.mxu1 %v1079_v14 }
   0xe   : > { %s1172_s27 = sshll.u32 %s1272_s22, 2  ;;  %1014 = vmatprep.subr.bf16.mxu1 %v1104_v1 }
   0xf   : > { %s255_s30 = scalar_lea.vmem %s1264_s0, %s1172_s27  ;;  %s259_s9 = scalar_lea.vmem %s1265_s1, %s1172_s27 }
  0x10   : > { %v265_v3 = vld [vmem:[%s255_s30] sm:$0xf]  ;;  %s1255_s29 = scalar_lea.vmem %s1270_s6, %s1172_s27  ;;  %s1113_s30 = smov 8  }
  0x11   : > { %v266_v4 = vld [vmem:[%s259_s9] sm:$0xf]  ;;  %1005 = vmatmul.mubr.msk.bf16.vlgmr.msra.gmra.mrb[0].mxu1 %vm291_vm1, %v265_v3  ;;  %s1114_s27 = smov 16  }
  0x12   : > { %v267_v5 = vadd.bf16 %v266_v4, %v265_v3  ;;  %1016 = vmatprep.mubr.msk.bf16.mxu1 %vm1105_vm0, %v1104_v1 }
  0x14   : > { %997 = vmatmul.mubr.msk.bf16.vlgmr.msra.gmra.mrb[0].mxu0 %vm291_vm1, %v267_v5 }
  0x15   : > { %1010 = vmatprep.mubr.msk.bf16.mxu0 %vm1105_vm0, %v1104_v1 }
  0xe4   : > { %v395_v47 = vpop.f32.mrb[0].mxu1 }
  0xe5   : > { %v396_v48 = vadd.f32 %v950_v46, %v395_v47  ;;  %v1006_v49 = vpop.f32.mrb[1].mxu1 }
  0xe6   : > { %v398_v50 = vpop.f32.mrb[2].mxu1 }
  0xe7   : > { %v329_v7 = vpop.f32.mrb[0].mxu0  ;;  %v1007_v51 = vpop.f32.mrb[3].mxu1  ;;  %v402_v52 = vpack.c.bf16 %v396_v48, %v396_v48 }
  0xe8   : > { %v330_v8 = vadd.f32 %v946_v6, %v329_v7  ;;  %v998_v9 = vpop.f32.mrb[1].mxu0 }
  0xe9   : > { %v332_v10 = vpop.f32.mrb[2].mxu0  ;;  %v470_v53 = vsel %vm468_vm3, %v402_v52, 0 }
  0xea   : > { %v401_v11 = vpack.c.bf16 %v330_v8, %v330_v8  ;;  %v999_v12 = vpop.f32.mrb[3].mxu0  ;;  %1015 = vmatpush3.bf16.msra.mxu1 %v470_v53 }
  0xeb   : > { %1026 = vmatprep.subr.bf16.mxu1 %v1104_v1 }
  0xec   : > { %515 = vrot.lane.b32.xlu1 %v401_v11, %s1106_s12  ;;  %404 = vrot.lane.b32.xlu0 %v401_v11, %s1107_s13 }
  0xf0   : > { %637 = vrot.lane.b32.xlu1 %v401_v11, %s1108_s14  ;;  %517 = vrot.lane.b32.xlu0 %v401_v11, %s1109_s15 }
  0xf4   : > { %756 = vrot.lane.b32.xlu1 %v401_v11, %s1110_s16  ;;  %635 = vrot.lane.b32.xlu0 %v401_v11, %s1111_s17 }
  0xf8   : > { %754 = vrot.lane.b32.xlu0 %v401_v11, %s1112_s18 }
 0x15e   : > { %v405_v15 = vpop.permute.xlu0 %404  ;;  %v516_v18 = vpop.permute.xlu1 %515 }
 0x15f   : > { %v411_v16 = vsel %vm406_vm2, %v405_v15, 0 }
 0x160   : > { %1009 = vmatpush3.bf16.xpose.msra.mxu0 %v411_v16 }
 0x161   : > { %1020 = vmatprep.subr.bf16.mxu0 %v1104_v1 }
 0x162   : > { %v518_v17 = vpop.permute.xlu0 %517  ;;  %v638_v20 = vpop.permute.xlu1 %637 }
 0x163   : > { %v523_v19 = vsel %vm406_vm2, %v518_v17, 0  ;;  %v643_v21 = vsel %vm406_vm2, %v638_v20, 0 }
 0x166   : > { %v757_v22 = vpop.permute.xlu1 %756  ;;  %v636_v23 = vpop.permute.xlu0 %635 }
 0x167   : > { %1011 = vmatmul.mubr.msk.bf16.vlgmr.msra.gmra.mrb[4].mxu0 %vm406_vm2, %v401_v11  ;;  %v762_v24 = vsel %vm406_vm2, %v757_v22, 0 }
 0x168   : > { %1021 = vmatpush3.bf16.xpose.msra.mxu0 %v523_v19  ;;  %1022 = vmatprep.mubr.msk.bf16.mxu0 %vm1105_vm0, %v1104_v1 }
 0x169   : > { %1032 = vmatprep.subr.bf16.mxu0 %v1104_v1 }
 0x16a   : > { %v755_v25 = vpop.permute.xlu0 %754 }
 0x16f   : > { %1023 = vmatmul.mubr.msk.bf16.vlgmr.msra.gmra.mrb[8].mxu0 %vm406_vm2, %v516_v18 }
 0x170   : > { %1033 = vmatpush3.bf16.xpose.msra.mxu0 %v643_v21  ;;  %1034 = vmatprep.mubr.msk.bf16.mxu0 %vm1105_vm0, %v1104_v1 }
 0x171   : > { %1044 = vmatprep.subr.bf16.mxu0 %v1104_v1 }
 0x177   : > { %1035 = vmatmul.mubr.msk.bf16.vlgmr.msra.gmra.mrb[12].mxu0 %vm406_vm2, %v636_v23 }
 0x178   : > { %1045 = vmatpush3.bf16.xpose.msra.mxu0 %v762_v24  ;;  %1046 = vmatprep.mubr.msk.bf16.mxu0 %vm1105_vm0, %v1104_v1 }
 0x17f   : > { %1047 = vmatmul.mubr.msk.bf16.vlgmr.msra.gmra.mrb[16].mxu0 %vm406_vm2, %v755_v25 }
 0x23a   : > { %v447_v26 = vpop.f32.mrb[4].mxu0 }
 0x23b   : > { %v1012_v27 = vpop.f32.mrb[5].mxu0  ;;  %v453_v28 = vsel %vm406_vm2, %v447_v26, -inf }
 0x23c   : > { %454 = vmax.xlane.f32.xlu1 %v453_v28  ;;  %v450_v29 = vpop.f32.mrb[6].mxu0 }
 0x23d   : > { %v1013_v30 = vpop.f32.mrb[7].mxu0 }
 0x242   : > { %v559_v31 = vpop.f32.mrb[8].mxu0 }
 0x243   : > { %v1024_v32 = vpop.f32.mrb[9].mxu0  ;;  %v565_v33 = vsel %vm406_vm2, %v559_v31, -inf }
 0x244   : > { %566 = vmax.xlane.f32.xlu0 %v565_v33  ;;  %v562_v34 = vpop.f32.mrb[10].mxu0 }
 0x245   : > { %v1025_v35 = vpop.f32.mrb[11].mxu0 }
 0x24a   : > { %v679_v36 = vpop.f32.mrb[12].mxu0 }
 0x24b   : > { %v1036_v37 = vpop.f32.mrb[13].mxu0  ;;  %v685_v38 = vsel %vm406_vm2, %v679_v36, -inf }
 0x24c   : > { %686 = vmax.xlane.f32.xlu0 %v685_v38  ;;  %v682_v39 = vpop.f32.mrb[14].mxu0 }
 0x24d   : > { %v1037_v40 = vpop.f32.mrb[15].mxu0 }
 0x252   : > { %v798_v41 = vpop.f32.mrb[16].mxu0 }
 0x253   : > { %v1048_v42 = vpop.f32.mrb[17].mxu0  ;;  %v804_v43 = vsel %vm406_vm2, %v798_v41, -inf }
 0x254   : > { %805 = vmax.xlane.f32.xlu1 %v804_v43  ;;  %v801_v44 = vpop.f32.mrb[18].mxu0 }
 0x255   : > { %v1049_v45 = vpop.f32.mrb[19].mxu0 }
 0x2c9   : > { %v455_v54 = vpop.xlane.xlu1 %454 }
 0x2ca   : > { %v456_v55 = vsub.f32 %v447_v26, %v455_v54 }
 0x2cc   : > { %v457_v56 = vmul.f32 1.442695, %v456_v55 }
 0x2ce   : > { %1080 = vpow2.f32 %v457_v56 }
 0x2d1   : > { %v567_v57 = vpop.xlane.xlu0 %566 }
 0x2d2   : > { %v568_v58 = vsub.f32 %v559_v31, %v567_v57 }
 0x2d4   : > { %v569_v59 = vmul.f32 1.442695, %v568_v58 }
 0x2d6   : > { %1082 = vpow2.f32 %v569_v59 }
 0x2d8   : > { %v1081_v60 = vpop.eup %1080 }
 0x2d9   : > { %v687_v61 = vpop.xlane.xlu0 %686  ;;  %v459_v62 = vsel %vm406_vm2, %v1081_v60, 0.0 }
 0x2da   : > { %v688_v63 = vsub.f32 %v679_v36, %v687_v61  ;;  %460 = vadd.xlane.f32.xlu0 %v459_v62 }
 0x2dc   : > { %v689_v0 = vmul.f32 1.442695, %v688_v63 }
 0x2de   : > { %1084 = vpow2.f32 %v689_v0 }
 0x2e0   : > { %v1083_v2 = vpop.eup %1082 }
 0x2e1   : > { %v571_v3 = vsel %vm406_vm2, %v1083_v2, 0.0  ;;  %v806_v6 = vpop.xlane.xlu1 %805 }
 0x2e2   : > { %572 = vadd.xlane.f32.xlu1 %v571_v3  ;;  %v807_v7 = vsub.f32 %v798_v41, %v806_v6 }
 0x2e4   : > { %v808_v8 = vmul.f32 1.442695, %v807_v7 }
 0x2e6   : > { %1086 = vpow2.f32 %v808_v8 }
 0x2e8   : > { %v1085_v4 = vpop.eup %1084 }
 0x2e9   : > { %v691_v5 = vsel %vm406_vm2, %v1085_v4, 0.0 }
 0x2ea   : > { %692 = vadd.xlane.f32.xlu0 %v691_v5 }
 0x2f0   : > { %v1087_v9 = vpop.eup %1086 }
 0x2f1   : > { %v810_v10 = vsel %vm406_vm2, %v1087_v9, 0.0 }
 0x2f3   : > { %697 = vrot.lane.b32.xlu1 %v402_v52, %s1111_s17 }
 0x300   : > { %578 = vrot.lane.b32.xlu0 %v402_v52, %s1106_s12 }
 0x317   : > { %811 = vadd.xlane.f32.xlu1 %v810_v10 }
 0x328   : > { %816 = vrot.lane.b32.xlu1 %v402_v52, %s1112_s18 }
 0x367   : > { %v461_v11 = vpop.xlane.xlu0 %460 }
 0x368   : > { %1088 = vrcp.f32 %v461_v11 }
 0x36f   : > { %v573_v12 = vpop.xlane.xlu1 %572 }
 0x370   : > { %1090 = vrcp.f32 %v573_v12 }
 0x372   : > { %v1089_v13 = vpop.eup %1088 }
 0x373   : > { %v463_v14 = vmul.f32 %v1089_v13, %v1081_v60  ;;  %v698_v21 = vpop.permute.xlu1 %697 }
 0x374   : > { %v703_v23 = vsel %vm468_vm3, %v698_v21, 0 }
 0x375   : > { %v464_v15 = vpack.c.bf16 %v463_v14, %v463_v14 }
 0x377   : > { %1017 = vmatmul.mubr.msk.bf16.vlgmr.msra.gmra.mrb[4].mxu1 %vm406_vm2, %v464_v15  ;;  %v693_v16 = vpop.xlane.xlu0 %692 }
 0x378   : > { %1092 = vrcp.f32 %v693_v16  ;;  %1028 = vmatprep.mubr.msk.bf16.mxu1 %vm1105_vm0, %v1104_v1 }
 0x37a   : > { %v1091_v17 = vpop.eup %1090 }
 0x37b   : > { %v575_v18 = vmul.f32 %v1091_v17, %v1083_v2  ;;  %v579_v19 = vpop.permute.xlu0 %578 }
 0x37c   : > { %v584_v20 = vsel %vm468_vm3, %v579_v19, 0 }
 0x37d   : > { %1027 = vmatpush3.bf16.msra.mxu1 %v584_v20  ;;  %v576_v22 = vpack.c.bf16 %v575_v18, %v575_v18 }
 0x37e   : > { %1038 = vmatprep.subr.bf16.mxu1 %v1104_v1 }
 0x380   : > { %1029 = vmatmul.mubr.msk.bf16.vlgmr.msra.gmra.mrb[8].mxu1 %vm406_vm2, %v576_v22 }
 0x381   : > { %1039 = vmatpush3.bf16.msra.mxu1 %v703_v23  ;;  %1040 = vmatprep.mubr.msk.bf16.mxu1 %vm1105_vm0, %v1104_v1 }
 0x382   : > { %v1093_v24 = vpop.eup %1092  ;;  %1050 = vmatprep.subr.bf16.mxu1 %v1104_v1 }
 0x383   : > { %v695_v25 = vmul.f32 %v1093_v24, %v1085_v4 }
 0x385   : > { %v696_v26 = vpack.c.bf16 %v695_v25, %v695_v25 }
 0x388   : > { %1041 = vmatmul.mubr.msk.bf16.vlgmr.msra.gmra.mrb[12].mxu1 %vm406_vm2, %v696_v26 }
 0x389   : > { %1052 = vmatprep.mubr.msk.bf16.mxu1 %vm1105_vm0, %v1104_v1 }
 0x3a4   : > { %v812_v27 = vpop.xlane.xlu1 %811 }
 0x3a5   : > { %1094 = vrcp.f32 %v812_v27 }
 0x3a8   : > { %v817_v28 = vpop.permute.xlu1 %816 }
 0x3a9   : > { %v822_v29 = vsel %vm468_vm3, %v817_v28, 0 }
 0x3aa   : > { %1051 = vmatpush3.bf16.msra.mxu1 %v822_v29 }
 0x3af   : > { %v1095_v30 = vpop.eup %1094 }
 0x3b0   : > { %v814_v31 = vmul.f32 %v1095_v30, %v1087_v9 }
 0x3b2   : > { %v815_v32 = vpack.c.bf16 %v814_v31, %v814_v31 }
 0x3b4   : > { %1053 = vmatmul.mubr.msk.bf16.vlgmr.msra.gmra.mrb[16].mxu1 %vm406_vm2, %v815_v32 }
 0x44a   : > { %v506_v33 = vpop.f32.mrb[4].mxu1 }
 0x44b   : > { %v512_v1 = vpack.c.bf16 %v506_v33, %v506_v33  ;;  %v1018_v34 = vpop.f32.mrb[5].mxu1 }
 0x44c   : > { %v509_v35 = vpop.f32.mrb[6].mxu1 }
 0x44d   : > { %514 = vst.msk [vmem:[%s1255_s29] sm:$0xf] %vm513_vm4, %v512_v1  ;;  %v1019_v36 = vpop.f32.mrb[7].mxu1 }
 0x453   : > { %v620_v37 = vpop.f32.mrb[8].mxu1 }
 0x454   : > { %v967_v38 = vpack.c.bf16 %v620_v37, %v620_v37  ;;  %v1030_v39 = vpop.f32.mrb[9].mxu1 }
 0x455   : > { %v623_v40 = vpop.f32.mrb[10].mxu1 }
 0x456   : > { %630 = vrot.lane.b32.xlu0 %v967_v38, %s1113_s30  ;;  %v1031_v41 = vpop.f32.mrb[11].mxu1 }
 0x45b   : > { %v739_v42 = vpop.f32.mrb[12].mxu1 }
 0x45c   : > { %v968_v43 = vpack.c.bf16 %v739_v42, %v739_v42  ;;  %v1042_v44 = vpop.f32.mrb[13].mxu1 }
 0x45d   : > { %v742_v45 = vpop.f32.mrb[14].mxu1 }
 0x45e   : > { %749 = vrot.lane.b32.xlu1 %v968_v43, %s1114_s27  ;;  %v1043_v46 = vpop.f32.mrb[15].mxu1 }
 0x487   : > { %v858_v47 = vpop.f32.mrb[16].mxu1 }
 0x488   : > { %v969_v48 = vpack.c.bf16 %v858_v47, %v858_v47  ;;  %v1054_v49 = vpop.f32.mrb[17].mxu1 }
 0x489   : > { %v861_v50 = vpop.f32.mrb[18].mxu1 }
 0x48a   : > { %868 = vrot.lane.b32.xlu0 %v969_v48, %s1115_s7  ;;  %v1055_v51 = vpop.f32.mrb[19].mxu1 }
 0x4c8   : > { %v631_v52 = vpop.permute.xlu0 %630 }
 0x4c9   : > { %634 = vst.msk [vmem:[%s1255_s29] sm:$0xf] %vm633_vm5, %v631_v52 }
 0x4d0   : > { %v750_v53 = vpop.permute.xlu1 %749 }
 0x4d1   : > { %753 = vst.msk [vmem:[%s1255_s29] sm:$0xf] %vm752_vm6, %v750_v53 }
 0x4fc   : > { %v869_v54 = vpop.permute.xlu0 %868 }
 0x4fd   : > { %872 = vst.msk [vmem:[%s1255_s29] sm:$0xf] %vm871_vm7, %v869_v54 }
 0x4fe PF: > { %s16_s21 = sadd.s32 1, %s1102_s21  }
 0x4ff   : > { %p13_p4 = scmp.ge.s32.totalorder %s16_s21, 4  }
 0x501   :  { %15 = sbr.rel (!%p13_p4) target bundleno = 1 (0x1), region = 77 }

</bundles_post_ra>
